<compile_context>
chip_gen: v7x
topology: tpu7x:2x2x1
jax: 0.10.0
libtpu: 0.0.40
codegen_flags: <defaults>
</compile_context>

<pallas_src>
import jax
import jax.numpy as jnp
from jax.experimental import pallas as pl
from jax.experimental.pallas import tpu as pltpu


_LANE = 128
_SUBLANE = 8


def _round_up(a, b):
    return ((a + b - 1) // b) * b


def _presence_kernel(x_ref, w1_ref, b1_ref, dw_ref, dbg_ref, o_ref):
    # x:   (T, D)  slot-feature rows, in the input dtype (no f32 upcast of the
    #              streamed tensor; MXU accumulates in f32).
    # w1:  (D, H)  first Linear weight (grid-invariant / resident)
    # b1:  (1, H)  first Linear bias (f32)
    # dw:  (1, H)  w2[:, 1] - w2[:, 0] (f32)
    # dbg: (T, 1)  (b2[1] - b2[0]) + (gumbel1 - gumbel0) per row (f32)
    # o:   (T, 1)  hard keep decision
    h = jnp.dot(x_ref[...], w1_ref[...], preferred_element_type=jnp.float32)
    h = jnp.maximum(h + b1_ref[...], 0.0)

    # Second Linear + gumbel argmax reduced to a sign test on the logit
    # difference.  The 1-column contraction is done on the VPU (broadcast
    # multiply) + XLU (lane reduction) instead of a 1-column MXU matmul
    # (poor MXU utilization + drain latency in the tail of every step).
    score = jnp.sum(h * dw_ref[...], axis=-1, keepdims=True) + dbg_ref[...]

    # prev_decision is all ones -> hard_keep_decision == keep.  Exact ties map
    # to keep = 0, matching torch.argmax's first-max convention.
    o_ref[...] = (score > 0.0).astype(o_ref.dtype)


def _select_row_tile(n_rows, d, h, in_bytes, out_bytes, max_row_tile,
                     vmem_limit_bytes):
    """Largest VMEM-feasible row tile; >= 2 grid steps for large N (v7x)."""
    budget = (vmem_limit_bytes * 3) // 4              # compiler headroom
    lanes_d = _round_up(d, _LANE)
    lanes_h = _round_up(h, _LANE)
    # Per-row VMEM of the double-buffered streams, with (T, 1) columns counted
    # as lane-padded to 128 (worst-case Mosaic layout):
    per_row = 2 * (lanes_d * in_bytes                 # x tile
                   + _LANE * 4                        # dbg (f32)
                   + _LANE * out_bytes)               # output
    # Grid-invariant operands (also double-buffered by the default pipeline).
    # TODO(synk): at production H*D, mark these pipeline_mode=pl.Buffered(1)
    # to recover this headroom; negligible at H=D=32.
    const_bytes = 2 * (_round_up(d, _SUBLANE) * lanes_h * in_bytes
                       + 2 * _SUBLANE * lanes_h * 4)
    cap = max(_SUBLANE,
              ((budget - const_bytes) // per_row) // _SUBLANE * _SUBLANE)
    row_tile = min(max_row_tile, cap)

    if n_rows <= row_tile and n_rows < 256:
        # Small problem: one full-extent block (no padding, no extra pipeline
        # steps).  On single-TC v5e/v6e fewer, bigger steps is strictly best.
        return n_rows, 1
    # Large problem: keep >= 2 "parallel" grid steps so both v7x TensorCores
    # get work (costs ~0.35 us on single-TC chips, negligible at this size).
    n_steps = max(2, pl.cdiv(n_rows, row_tile))
    row_tile = _round_up(pl.cdiv(n_rows, n_steps), _SUBLANE)
    return row_tile, n_steps


def presence_nn_forward(slots, w1, b1, w2, b2, gumbel, *,
                        max_row_tile=8192,
                        vmem_limit_bytes=32 * 1024 * 1024):
    """slots: (B, K, D) -> hard keep decision (B, K) in slots.dtype.

    Assumptions matching the PyTorch module's forward(): prev_decision is all
    ones and softmax(slots_keep_prob)[..., 1] is computed but discarded, so
    both are omitted here.
    """
    B, K, D = slots.shape
    H = w1.shape[1]
    N = B * K
    f32 = jnp.float32

    # Row-major activations: reshape is a view, no transpose / upcast.
    x = slots.reshape(N, D)
    w1k = w1.astype(slots.dtype)                              # (D, H), tiny
    b1k = b1.reshape(1, H).astype(f32)                        # (1, H)
    dw = (w2[:, 1] - w2[:, 0]).astype(f32).reshape(1, H)      # (1, H)
    b2f = b2.reshape(-1).astype(f32)
    g = gumbel.reshape(N, 2).astype(f32)
    dbg = (g[:, 1] - g[:, 0] + (b2f[1] - b2f[0])).reshape(N, 1)   # (N, 1)

    in_bytes = jnp.dtype(slots.dtype).itemsize
    out_bytes = in_bytes
    row_tile, n_steps = _select_row_tile(N, D, H, in_bytes, out_bytes,
                                         max_row_tile, vmem_limit_bytes)
    Np = row_tile * n_steps
    if Np != N:
        # TODO(synk): for production N not divisible by the tile, handle the
        # ragged tail in-kernel instead of this pad (it copies slots once).
        x = jnp.pad(x, ((0, Np - N), (0, 0)))
        dbg = jnp.pad(dbg, ((0, Np - N), (0, 0)))

    out = pl.pallas_call(
        _presence_kernel,
        out_shape=jax.ShapeDtypeStruct((Np, 1), slots.dtype),
        grid_spec=pltpu.PrefetchScalarGridSpec(
            num_scalar_prefetch=0,
            grid=(n_steps,),
            in_specs=[
                pl.BlockSpec((row_tile, D), lambda i: (i, 0)),   # slots tile
                pl.BlockSpec((D, H), lambda i: (0, 0)),          # w1 (resident)
                pl.BlockSpec((1, H), lambda i: (0, 0)),          # b1
                pl.BlockSpec((1, H), lambda i: (0, 0)),          # w2 column diff
                pl.BlockSpec((row_tile, 1), lambda i: (i, 0)),   # bias+gumbel diff
            ],
            out_specs=pl.BlockSpec((row_tile, 1), lambda i: (i, 0)),
        ),
        compiler_params=pltpu.CompilerParams(
            dimension_semantics=("parallel",),
            vmem_limit_bytes=vmem_limit_bytes,
        ),
    )(x, w1k, b1k, dw, dbg)

    # Padded rows (N..Np) may contain spurious ones (relu(b1) @ dw can be > 0);
    # they are sliced off here and must never be consumed downstream.
    return out[:N, 0].reshape(B, K)


def init_params(key, input_dim, hidden_dim, output_dim, dtype=jnp.float32):
    """Deterministic synthetic init. Biases zeroed (matches nn.init.zeros_)."""
    k1, k2 = jax.random.split(key)
    w1 = (jax.random.normal(k1, (input_dim, hidden_dim), dtype) /
          jnp.sqrt(jnp.asarray(input_dim, dtype)))
    b1 = jnp.zeros((1, hidden_dim), dtype)
    w2 = (jax.random.normal(k2, (hidden_dim, output_dim), dtype) /
          jnp.sqrt(jnp.asarray(hidden_dim, dtype)))
    b2 = jnp.zeros((1, output_dim), dtype)
    return w1, b1, w2, b2


if __name__ == "__main__":
    # Small shapes consistent with the module: batch=2, slots=8, feature=32.
    B, K, D, H, OUT = 2, 8, 32, 32, 2
    key = jax.random.PRNGKey(0)
    k_slots, k_params, k_gumbel = jax.random.split(key, 3)

    slots = jax.random.normal(k_slots, (B, K, D), jnp.float32)
    w1, b1, w2, b2 = init_params(k_params, D, H, OUT)

    # Gumbel noise for F.gumbel_softmax, generated deterministically as glue
    # (the module samples it internally; RNG is not the compute hot path).
    gumbel = jax.random.gumbel(k_gumbel, (B, K, OUT), jnp.float32)

    hard_keep_decision = presence_nn_forward(slots, w1, b1, w2, b2, gumbel)
    hard_keep_decision = jax.block_until_ready(hard_keep_decision)

    # Reference check in plain JAX (original, non-difference form).
    x = slots.reshape(B * K, D)
    h = jnp.maximum(x @ w1 + b1, 0.0)
    logits = h @ w2 + b2
    y = logits + gumbel.reshape(B * K, OUT)   # tau = 1
    ref = (jnp.argmax(y, axis=-1) == 1).astype(jnp.float32).reshape(B, K)

    assert hard_keep_decision.shape == (B, K)
    assert jnp.allclose(hard_keep_decision, ref), (hard_keep_decision, ref)

    print("KERNEL_OK")
</pallas_src>

<mosaic_0001>
module attributes {stable_mosaic.version = 11 : i64} {
  func.func @_presence_kernel(%arg0: i32, %arg1: memref<16x32xf32, #tpu.memory_space<vmem>>, %arg2: memref<32x32xf32, #tpu.memory_space<vmem>>, %arg3: memref<1x32xf32, #tpu.memory_space<vmem>>, %arg4: memref<1x32xf32, #tpu.memory_space<vmem>>, %arg5: memref<16x1xf32, #tpu.memory_space<vmem>>, %arg6: memref<16x1xf32, #tpu.memory_space<vmem>>) attributes {dimension_semantics = [#tpu.dimension_semantics<parallel>], iteration_bounds = array<i64: 1>, scalar_prefetch = 0 : i64, scratch_operands = 0 : i64, tpu.core_type = #tpu.core_type<tc>, window_params = [{transform_indices = @transform_0, window_bounds = array<i64: 16, 32>}, {pipeline_mode = #tpu.pipeline_mode<synchronous>, transform_indices = @transform_1, window_bounds = array<i64: 32, 32>}, {pipeline_mode = #tpu.pipeline_mode<synchronous>, transform_indices = @transform_2, window_bounds = array<i64: 1, 32>}, {pipeline_mode = #tpu.pipeline_mode<synchronous>, transform_indices = @transform_3, window_bounds = array<i64: 1, 32>}, {transform_indices = @transform_4, window_bounds = array<i64: 16, 1>}, {transform_indices = @transform_5, window_bounds = array<i64: 16, 1>}]} {
    %c0 = arith.constant 0 : index
    %c0_0 = arith.constant 0 : index
    %0 = vector.load %arg1[%c0, %c0_0] : memref<16x32xf32, #tpu.memory_space<vmem>>, vector<16x32xf32>
    %c0_1 = arith.constant 0 : index
    %c0_2 = arith.constant 0 : index
    %1 = vector.load %arg2[%c0_1, %c0_2] : memref<32x32xf32, #tpu.memory_space<vmem>>, vector<32x32xf32>
    %cst = arith.constant dense<0.000000e+00> : vector<16x32xf32>
    %2 = tpu.matmul %0, %1, %cst {dimension_numbers = #tpu.dot_dimension_numbers<[1], [0], [0], [1], [0, 0, 1, 1], [], []>} : vector<16x32xf32>, vector<32x32xf32>, vector<16x32xf32> -> vector<16x32xf32>
    %c0_3 = arith.constant 0 : index
    %c0_4 = arith.constant 0 : index
    %3 = vector.load %arg3[%c0_3, %c0_4] : memref<1x32xf32, #tpu.memory_space<vmem>>, vector<1x32xf32>
    %4 = vector.broadcast %3 : vector<1x32xf32> to vector<16x32xf32>
    %5 = arith.addf %2, %4 : vector<16x32xf32>
    %cst_5 = arith.constant 0.000000e+00 : f32
    %6 = vector.broadcast %cst_5 : f32 to vector<16x32xf32>
    %7 = arith.maximumf %5, %6 : vector<16x32xf32>
    %c0_6 = arith.constant 0 : index
    %c0_7 = arith.constant 0 : index
    %8 = vector.load %arg4[%c0_6, %c0_7] : memref<1x32xf32, #tpu.memory_space<vmem>>, vector<1x32xf32>
    %9 = vector.broadcast %8 : vector<1x32xf32> to vector<16x32xf32>
    %10 = arith.mulf %7, %9 : vector<16x32xf32>
    %cst_8 = arith.constant dense<0.000000e+00> : vector<16xf32>
    %11 = vector.multi_reduction <add>, %10, %cst_8 [1] : vector<16x32xf32> to vector<16xf32>
    %12 = vector.shape_cast %11 : vector<16xf32> to vector<16x1xf32>
    %c0_9 = arith.constant 0 : index
    %c0_10 = arith.constant 0 : index
    %13 = vector.load %arg5[%c0_9, %c0_10] : memref<16x1xf32, #tpu.memory_space<vmem>>, vector<16x1xf32>
    %14 = arith.addf %12, %13 : vector<16x1xf32>
    %cst_11 = arith.constant 0.000000e+00 : f32
    %15 = vector.broadcast %cst_11 : f32 to vector<16x1xf32>
    %16 = arith.cmpf ogt, %14, %15 : vector<16x1xf32>
    %17 = arith.extui %16 : vector<16x1xi1> to vector<16x1xi32>
    %18 = arith.sitofp %17 : vector<16x1xi32> to vector<16x1xf32>
    %c0_12 = arith.constant 0 : index
    %c0_13 = arith.constant 0 : index
    %19 = vector.load %arg6[%c0_12, %c0_13] : memref<16x1xf32, #tpu.memory_space<vmem>>, vector<16x1xf32>
    tpu.vector_store %arg6[%c0_12, %c0_13], %18 {strides = array<i32>} : memref<16x1xf32, #tpu.memory_space<vmem>>, vector<16x1xf32>,
    return
  }
  func.func @transform_0(%arg0: i32) -> (i32, i32) {
    %c0_i32 = arith.constant 0 : i32
    %c0_i32_0 = arith.constant 0 : i32
    return %arg0, %c0_i32 : i32, i32
  }
  func.func @transform_1(%arg0: i32) -> (i32, i32) {
    %c0_i32 = arith.constant 0 : i32
    %c0_i32_0 = arith.constant 0 : i32
    %c0_i32_1 = arith.constant 0 : i32
    return %c0_i32, %c0_i32_0 : i32, i32
  }
  func.func @transform_2(%arg0: i32) -> (i32, i32) {
    %c0_i32 = arith.constant 0 : i32
    %c0_i32_0 = arith.constant 0 : i32
    %c0_i32_1 = arith.constant 0 : i32
    return %c0_i32, %c0_i32_0 : i32, i32
  }
  func.func @transform_3(%arg0: i32) -> (i32, i32) {
    %c0_i32 = arith.constant 0 : i32
    %c0_i32_0 = arith.constant 0 : i32
    %c0_i32_1 = arith.constant 0 : i32
    return %c0_i32, %c0_i32_0 : i32, i32
  }
  func.func @transform_4(%arg0: i32) -> (i32, i32) {
    %c0_i32 = arith.constant 0 : i32
    %c0_i32_0 = arith.constant 0 : i32
    return %arg0, %c0_i32 : i32, i32
  }
  func.func @transform_5(%arg0: i32) -> (i32, i32) {
    %c0_i32 = arith.constant 0 : i32
    %c0_i32_0 = arith.constant 0 : i32
    return %arg0, %c0_i32 : i32, i32
  }
}

</mosaic_0001>

<bundles_post_ra>
// kernel: tpu_custom_call.1
= control target key start
LH: loop header
LB: loop body
LE: loop exit
PB: predicated region body
PF: predicated region fallthrough
CT: control target
= control target key end

     0   :  { %10 = vsyncpa [#allocation3], 0  ;;  %s223_s18 = smov [#allocation2]   ;;  %s297_s0 = inlined_call_operand.vmem [shape: f32[16,32], index: 0, kind: input, shape index: {}]   ;;  %s298_s1 = inlined_call_operand.hbm [shape: f32[32,32], index: 1, kind: input, shape index: {}]   ;;  %s299_s2 = inlined_call_operand.vmem [shape: f32[1,32], index: 2, kind: input, shape index: {}]   ;;  %s300_s3 = inlined_call_operand.vmem [shape: f32[1,32], index: 3, kind: input, shape index: {}]   ;;  %s301_s4 = inlined_call_operand.vmem [shape: f32[16,1], index: 4, kind: input, shape index: {}]   ;;  %s302_s5 = inlined_call_operand.vmem [shape: f32[16,1], index: 5, kind: output, shape index: {}]  }
   0x1   :  { %s18_s19 = sshll.u32 %s223_s18, 4  ;;  %s199_s22 = scalar_lea.hbm %s298_s1, 512  ;;  %s19_s19 = int_to_ptr.vmem [resolvable:$true] %s18_s19 }
   0x2   :  { %p200_p0 = scmp.ne.s32.totalorder %s298_s1, %s199_s22  ;;  %p203_p1 = scmp.lt.u32.totalorder %s199_s22, %s298_s1 }
   0x4   :  { %p205_p2 = pnand %p203_p1, %p200_p0 }
   0x6   :  { %208 = shalt.err (!%p205_p2)
}
   0x7   :  { %s209_s27 = scalar_lea.vmem %s19_s19, 512  ;;  %p214_p4 = scmp.lt.s32.totalorder %s19_s19, %s19_s19 }
   0x8   :  { %p210_p3 = scmp.ne.s32.totalorder %s19_s19, %s209_s27  ;;  %p215_p5 = scmp.lt.s32.totalorder %s209_s27, %s209_s27 }
   0xa   :  { %p216_p6 = por %p215_p5, %p214_p4 }
   0xc   :  { %p217_p7 = pnand %p216_p6, %p210_p3 }
   0xe   :  { %220 = shalt.err (!%p217_p7)
}
   0xf   :  { %s224_s28 = smov 128   ;;  %s225_s29 = smov 8  }
  0x10   :  { %24 = dma.hbm_to_vmem [thread:$0]  %s298_s1, 512, %s19_s19, [#allocation3], %s224_s28, %s224_s28, %s225_s29  }
  0x11   :  { %221 = dma.done.wait [#allocation3], 512  }
  0x12   :  { %222 = vsyncadd [#allocation3], 4294966784  ;;  %vm47_vm0 = vcmask 261120   ;;  %v36_v0 = vld [vmem:[#allocation2] sm:$0xff]  ;;  %v37_v1 = vld [vmem:[#allocation2 + $0x8] sm:$0xff]  ;;  %vm156_vm1 = vcmask 7168  }
  0x13   :  { %v38_v2 = vld [vmem:[#allocation2 + $0x10] sm:$0xff]  ;;  %v187_v3 = vpack.c.bf16 %v37_v1, %v36_v0  ;;  %v39_v4 = vld [vmem:[#allocation2 + $0x18] sm:$0xff]  ;;  %v34_v5 = vld [vmem:[%s297_s0] sm:$0xff]  ;;  %v226_v24 = vmov 0.0  }
  0x14   :  { %v191_v6 = vpack.c.bf16 %v39_v4, %v38_v2  ;;  %184 = vmatprep.mubr.msk.f32.mxu0 %vm47_vm0, %v34_v5  ;;  %v35_v7 = vld [vmem:[%s297_s0 + $0x8] sm:$0xff]  ;;  %v164_v8 = vld [vmem:[%s299_s2] ss:$0 sm:$0xff] }
  0x15   :  { %188 = vmatprep.subr.bf16.mxu0 %v187_v3  ;;  %v167_v13 = vld [vmem:[%s300_s3] ss:$0 sm:$0xff]  ;;  %v147_v23 = vld [vmem:[%s301_s4 + $0x8] sm:$0xff] }
  0x16   :  { %190 = vmatpush3.bf16.msra.mxu0 %v187_v3  ;;  %v146_v20 = vld [vmem:[%s301_s4] sm:$0xff] }
  0x17   :  { %192 = vmatprep.subr.bf16.mxu0 %v191_v6 }
  0x1a   :  { %194 = vmatpush3.bf16.msra.mxu0 %v191_v6 }
  0x1d   :  { %185 = vmatmul.mubr.msk.f32.vlgmr.msra.gmra.mrb[0].mxu0 %vm47_vm0, %v35_v7 }
  0xf0   :  { %v186_v9 = vpop.f32.mrb[0].mxu0 }
  0xf1   :  { %v126_v10 = vadd.f32 %v186_v9, %v164_v8  ;;  %v120_v11 = vpop.f32.mrb[1].mxu0 }
  0xf2   :  { %v121_v12 = vadd.f32 %v164_v8, %v120_v11 }
  0xf3   :  { %v130_v14 = vmax.f32 %v126_v10, 0.0 }
  0xf4   :  { %v129_v15 = vmax.f32 %v121_v12, 0.0 }
  0xf5   :  { %v139_v18 = vmul.f32 %v167_v13, %v130_v14 }
  0xf6   :  { %v138_v16 = vmul.f32 %v167_v13, %v129_v15 }
  0xf7   :  { %v143_v19 = vsel %vm47_vm0, %v139_v18, 0.0 }
  0xf8   :  { %v140_v17 = vsel %vm47_vm0, %v138_v16, 0.0 }
  0xf9   :  { %141 = vadd.xlane.f32.xlu0 %v140_v17 }
  0xfd   :  { %144 = vadd.xlane.f32.xlu0 %v143_v19 }
 0x186   :  { %v142_v21 = vpop.xlane.xlu0 %141 }
 0x187   :  { %v148_v22 = vadd.f32 %v146_v20, %v142_v21 }
 0x189   :  { %vm150_vm2 = vcmp.gt.f32.partialorder %v148_v22, 0.0 }
 0x18a   :  { %v168_v25 = vsel %vm150_vm2, 1.0, %v226_v24  ;;  %v145_v26 = vpop.xlane.xlu0 %144 }
 0x18b   :  { %157 = vst.msk [vmem:[%s302_s5] sm:$0xff] %vm156_vm1, %v168_v25  ;;  %v149_v27 = vadd.f32 %v147_v23, %v145_v26 }
 0x18d   :  { %vm151_vm3 = vcmp.gt.f32.partialorder %v149_v27, 0.0 }
 0x18e   :  { %v169_v28 = vsel %vm151_vm3, 1.0, %v226_v24 }
 0x18f   :  { %158 = vst.msk [vmem:[%s302_s5 + $0x8] sm:$0xff] %vm156_vm1, %v169_v28 }
 0x190   :  { %163 = vsyncpa [#allocation3], 1 }

</bundles_post_ra>
